<compile_context>
chip_gen: v7x
topology: tpu7x:2x2x1
jax: 0.10.0
libtpu: 0.0.40
codegen_flags: <defaults>
</compile_context>

<pallas_src>
import functools
import math

import jax
import jax.numpy as jnp
from jax.experimental import pallas as pl
from jax.experimental.pallas import tpu as pltpu


def _expert_kernel(x_ref, w13_ref, w2_ref, o_ref, acc_ref, *, ti):
    i = pl.program_id(1)

    @pl.when(i == 0)
    def _():
        acc_ref[...] = jnp.zeros_like(acc_ref)

    x = x_ref[...]                                                      # [tm, D]
    # One fused MXU dot for both the gate (w1) and value (w3) projections.
    h = jnp.dot(x, w13_ref[...], preferred_element_type=jnp.float32)    # [tm, 2*ti]
    h1 = h[:, :ti]                                                      # x @ w1 tile
    h3 = h[:, ti:]                                                      # x @ w3 tile
    gated = (h1 * jax.nn.sigmoid(h1)) * h3                              # SiLU gate, f32

    acc_ref[...] += jnp.dot(gated.astype(w2_ref.dtype), w2_ref[...],
                            preferred_element_type=jnp.float32)         # [tm, D]

    @pl.when(i == pl.num_programs(1) - 1)
    def _():
        o_ref[...] = acc_ref[...].astype(o_ref.dtype)


def _round_up(x: int, m: int) -> int:
    return ((x + m - 1) // m) * m


def _pick_inter_tile(I: int, desired: int = 256, multiple: int = 64) -> int:
    """Largest divisor of I that is <= desired and a multiple of `multiple`;
    falls back to I itself (block == full dim is always a legal block shape)."""
    if I <= desired:
        return I
    best = None
    t = multiple
    while t <= desired:
        if I % t == 0:
            best = t
        t += multiple
    return best if best is not None else I


def expert_forward(x, w1, w3, w2, *, token_tile=None, inter_tile=None):
    """x: [T, D]; w1: [D, I]; w3: [D, I]; w2: [I, D] -> [T, D]."""
    T, D = x.shape
    I = w1.shape[1]
    out_dtype = x.dtype

    # --- tile selection ---------------------------------------------------
    sublane = 16 if x.dtype == jnp.bfloat16 else 8
    tm = token_tile if token_tile is not None else min(256, _round_up(T, sublane))
    tm = max(sublane, _round_up(tm, sublane))
    T_pad = _round_up(T, tm)

    # ti multiple of 64 keeps the fused [D, 2*ti] block lane-aligned (2*ti % 128 == 0).
    ti = inter_tile if inter_tile is not None else _pick_inter_tile(I)
    assert I % ti == 0, "inter_tile must divide inter_dim"
    n_i = I // ti

    # --- zero-pad tokens to a whole number of tiles -------------------------
    if T_pad != T:
        x = jnp.pad(x, ((0, T_pad - T), (0, 0)))

    # --- fuse w1/w3 into a single weight, interleaved per i-tile ------------
    # columns [i*2ti, i*2ti+ti) = w1 tile i ; [i*2ti+ti, (i+1)*2ti) = w3 tile i
    w13 = jnp.concatenate(
        [w1.reshape(D, n_i, ti), w3.reshape(D, n_i, ti)], axis=-1
    ).reshape(D, 2 * I)

    grid = (T_pad // tm, n_i)

    itemsize = jnp.dtype(x.dtype).itemsize
    cost = pl.CostEstimate(
        flops=6 * T_pad * D * I,
        transcendentals=T_pad * I,
        bytes_accessed=(T_pad * D * itemsize                               # x
                        + 2 * D * I * jnp.dtype(w13.dtype).itemsize        # w13
                        + I * D * jnp.dtype(w2.dtype).itemsize             # w2
                        + T_pad * D * itemsize),                           # y
    )

    out = pl.pallas_call(
        functools.partial(_expert_kernel, ti=ti),
        out_shape=jax.ShapeDtypeStruct((T_pad, D), out_dtype),
        grid_spec=pltpu.PrefetchScalarGridSpec(
            num_scalar_prefetch=0,
            grid=grid,
            in_specs=[
                pl.BlockSpec((tm, D), lambda t, i: (t, 0)),        # x tile (reused over i)
                pl.BlockSpec((D, 2 * ti), lambda t, i: (0, i)),    # fused w1/w3 i-tile
                pl.BlockSpec((ti, D), lambda t, i: (i, 0)),        # w2 i-tile
            ],
            out_specs=pl.BlockSpec((tm, D), lambda t, i: (t, 0)),  # resident across i
            scratch_shapes=[pltpu.VMEM((tm, D), jnp.float32)],     # f32 accumulator
        ),
        compiler_params=pltpu.CompilerParams(
            dimension_semantics=("parallel", "arbitrary"),
            vmem_limit_bytes=64 * 1024 * 1024,
        ),
        cost_estimate=cost,
    )(x, w13, w2)

    return out[:T]


def xavier_normal(key, out_features, in_features, dtype=jnp.float32):
    # Matches torch.nn.init.xavier_normal_ for a [out, in] weight.
    std = math.sqrt(2.0 / (in_features + out_features))
    return std * jax.random.normal(key, (out_features, in_features), dtype=dtype)


def _reference(x, w1, w3, w2):
    h1 = x @ w1
    return ((h1 * jax.nn.sigmoid(h1)) * (x @ w3)) @ w2


if __name__ == "__main__":
    key = jax.random.PRNGKey(0)

    # ---- test 1: small shapes, T not a multiple of the tile (padding path) ----
    T, dim, inter_dim = 10, 32, 64
    kx, k1, k2, k3 = jax.random.split(key, 4)
    x = jax.random.normal(kx, (T, dim), dtype=jnp.float32)
    # PyTorch stores Linear weights as [out, in]; pre-transpose for the kernel.
    w1 = xavier_normal(k1, inter_dim, dim).T       # [D, I]
    w2 = xavier_normal(k2, dim, inter_dim).T       # [I, D]
    w3 = xavier_normal(k3, inter_dim, dim).T       # [D, I]

    y = jax.block_until_ready(expert_forward(x, w1, w3, w2))
    ref = _reference(x, w1, w3, w2)
    assert y.shape == ref.shape
    assert jnp.allclose(y, ref, atol=1e-5, rtol=1e-5), "mismatch vs reference (test 1)"

    # ---- test 2: multi-tile grid (token + reduction axes both > 1) ----
    T2, dim2, inter2 = 40, 128, 256
    kx2, k4, k5, k6 = jax.random.split(jax.random.PRNGKey(1), 4)
    x2 = jax.random.normal(kx2, (T2, dim2), dtype=jnp.float32)
    w1b = xavier_normal(k4, inter2, dim2).T
    w2b = xavier_normal(k5, dim2, inter2).T
    w3b = xavier_normal(k6, inter2, dim2).T

    y2 = jax.block_until_ready(
        expert_forward(x2, w1b, w3b, w2b, token_tile=16, inter_tile=64))
    ref2 = _reference(x2, w1b, w3b, w2b)
    assert y2.shape == ref2.shape
    assert jnp.allclose(y2, ref2, atol=1e-4, rtol=1e-4), "mismatch vs reference (test 2)"

    print("KERNEL_OK")
</pallas_src>

<mosaic_0001>
module attributes {stable_mosaic.version = 11 : i64} {
  func.func @_expert_kernel(%arg0: i32, %arg1: i32, %arg2: memref<16x32xf32, #tpu.memory_space<vmem>>, %arg3: memref<32x128xf32, #tpu.memory_space<vmem>>, %arg4: memref<64x32xf32, #tpu.memory_space<vmem>>, %arg5: memref<16x32xf32, #tpu.memory_space<vmem>>, %arg6: memref<16x32xf32, #tpu.memory_space<vmem>>) attributes {dimension_semantics = [#tpu.dimension_semantics<parallel>, #tpu.dimension_semantics<arbitrary>], iteration_bounds = array<i64: 1, 1>, scalar_prefetch = 0 : i64, scratch_operands = 1 : i64, tpu.core_type = #tpu.core_type<tc>, window_params = [{transform_indices = @transform_0, window_bounds = array<i64: 16, 32>}, {transform_indices = @transform_1, window_bounds = array<i64: 32, 128>}, {transform_indices = @transform_2, window_bounds = array<i64: 64, 32>}, {transform_indices = @transform_3, window_bounds = array<i64: 16, 32>}]} {
    %c0_i32 = arith.constant 0 : i32
    %0 = arith.cmpi eq, %arg1, %c0_i32 : i32
    %1 = arith.extui %0 : i1 to i32
    %c0_i32_0 = arith.constant 0 : i32
    %2 = arith.cmpi ne, %1, %c0_i32_0 : i32
    scf.if %2 {
      %cst_14 = arith.constant 0.000000e+00 : f32
      %23 = vector.broadcast %cst_14 : f32 to vector<16x32xf32>
      %c0_15 = arith.constant 0 : index
      %c0_16 = arith.constant 0 : index
      %24 = vector.load %arg6[%c0_15, %c0_16] : memref<16x32xf32, #tpu.memory_space<vmem>>, vector<16x32xf32>
      tpu.vector_store %arg6[%c0_15, %c0_16], %23 {strides = array<i32>} : memref<16x32xf32, #tpu.memory_space<vmem>>, vector<16x32xf32>,
    } else {
    }
    %c0 = arith.constant 0 : index
    %c0_1 = arith.constant 0 : index
    %3 = vector.load %arg2[%c0, %c0_1] : memref<16x32xf32, #tpu.memory_space<vmem>>, vector<16x32xf32>
    %c0_2 = arith.constant 0 : index
    %c0_3 = arith.constant 0 : index
    %4 = vector.load %arg3[%c0_2, %c0_3] : memref<32x128xf32, #tpu.memory_space<vmem>>, vector<32x128xf32>
    %cst = arith.constant dense<0.000000e+00> : vector<16x128xf32>
    %5 = tpu.matmul %3, %4, %cst {dimension_numbers = #tpu.dot_dimension_numbers<[1], [0], [0], [1], [0, 0, 1, 1], [], []>} : vector<16x32xf32>, vector<32x128xf32>, vector<16x128xf32> -> vector<16x128xf32>
    %6 = vector.extract_strided_slice %5 {offsets = [0, 0], sizes = [16, 64], strides = [1, 1]} : vector<16x128xf32> to vector<16x64xf32>
    %7 = vector.extract_strided_slice %5 {offsets = [0, 64], sizes = [16, 64], strides = [1, 1]} : vector<16x128xf32> to vector<16x64xf32>
    %8 = arith.negf %6 : vector<16x64xf32>
    %9 = math.exp %8 : vector<16x64xf32>
    %cst_4 = arith.constant 1.000000e+00 : f32
    %10 = vector.broadcast %cst_4 : f32 to vector<16x64xf32>
    %11 = arith.addf %10, %9 : vector<16x64xf32>
    %12 = arith.divf %10, %11 : vector<16x64xf32>
    %13 = arith.mulf %6, %12 : vector<16x64xf32>
    %14 = arith.mulf %13, %7 : vector<16x64xf32>
    %c0_5 = arith.constant 0 : index
    %c0_6 = arith.constant 0 : index
    %15 = vector.load %arg6[%c0_5, %c0_6] : memref<16x32xf32, #tpu.memory_space<vmem>>, vector<16x32xf32>
    %c0_7 = arith.constant 0 : index
    %c0_8 = arith.constant 0 : index
    %16 = vector.load %arg4[%c0_7, %c0_8] : memref<64x32xf32, #tpu.memory_space<vmem>>, vector<64x32xf32>
    %cst_9 = arith.constant dense<0.000000e+00> : vector<16x32xf32>
    %17 = tpu.matmul %14, %16, %cst_9 {dimension_numbers = #tpu.dot_dimension_numbers<[1], [0], [0], [1], [0, 0, 1, 1], [], []>} : vector<16x64xf32>, vector<64x32xf32>, vector<16x32xf32> -> vector<16x32xf32>
    %18 = arith.addf %15, %17 : vector<16x32xf32>
    %c0_10 = arith.constant 0 : index
    %c0_11 = arith.constant 0 : index
    %19 = vector.load %arg6[%c0_10, %c0_11] : memref<16x32xf32, #tpu.memory_space<vmem>>, vector<16x32xf32>
    tpu.vector_store %arg6[%c0_10, %c0_11], %18 {strides = array<i32>} : memref<16x32xf32, #tpu.memory_space<vmem>>, vector<16x32xf32>,
    %c0_i32_12 = arith.constant 0 : i32
    %20 = arith.cmpi eq, %arg1, %c0_i32_12 : i32
    %21 = arith.extui %20 : i1 to i32
    %c0_i32_13 = arith.constant 0 : i32
    %22 = arith.cmpi ne, %21, %c0_i32_13 : i32
    scf.if %22 {
      %c0_14 = arith.constant 0 : index
      %c0_15 = arith.constant 0 : index
      %23 = vector.load %arg6[%c0_14, %c0_15] : memref<16x32xf32, #tpu.memory_space<vmem>>, vector<16x32xf32>
      %c0_16 = arith.constant 0 : index
      %c0_17 = arith.constant 0 : index
      %24 = vector.load %arg5[%c0_16, %c0_17] : memref<16x32xf32, #tpu.memory_space<vmem>>, vector<16x32xf32>
      tpu.vector_store %arg5[%c0_16, %c0_17], %23 {strides = array<i32>} : memref<16x32xf32, #tpu.memory_space<vmem>>, vector<16x32xf32>,
    } else {
    }
    return
  }
  func.func @transform_0(%arg0: i32, %arg1: i32) -> (i32, i32) {
    %c0_i32 = arith.constant 0 : i32
    %c0_i32_0 = arith.constant 0 : i32
    return %arg0, %c0_i32 : i32, i32
  }
  func.func @transform_1(%arg0: i32, %arg1: i32) -> (i32, i32) {
    %c0_i32 = arith.constant 0 : i32
    %c0_i32_0 = arith.constant 0 : i32
    return %c0_i32, %arg1 : i32, i32
  }
  func.func @transform_2(%arg0: i32, %arg1: i32) -> (i32, i32) {
    %c0_i32 = arith.constant 0 : i32
    %c0_i32_0 = arith.constant 0 : i32
    return %arg1, %c0_i32 : i32, i32
  }
  func.func @transform_3(%arg0: i32, %arg1: i32) -> (i32, i32) {
    %c0_i32 = arith.constant 0 : i32
    %c0_i32_0 = arith.constant 0 : i32
    return %arg0, %c0_i32 : i32, i32
  }
}

</mosaic_0001>

<bundles_post_ra>
// kernel: tpu_custom_call.1
= control target key start
LH: loop header
LB: loop body
LE: loop exit
PB: predicated region body
PF: predicated region fallthrough
CT: control target
= control target key end

     0   :  { %8 = vsyncpa [#allocation4], 0  ;;  %s585_s0 = inlined_call_operand.hbm [shape: f32[16,32], index: 0, kind: input, shape index: {}]   ;;  %s586_s1 = inlined_call_operand.hbm [shape: f32[32,128], index: 1, kind: input, shape index: {}]   ;;  %s587_s2 = inlined_call_operand.hbm [shape: f32[64,32], index: 2, kind: input, shape index: {}]   ;;  %s588_s3 = inlined_call_operand.hbm [shape: f32[16,32], index: 3, kind: output, shape index: {}]  }
   0x1   :  { %9 = vsyncpa [#allocation7], 0 }
   0x2   :  { %10 = vsyncpa [#allocation5], 0  ;;  %s482_s12 = smov [#allocation6]   ;;  %s483_s14 = smov [#allocation3]  }
   0x3   :  { %s28_s13 = sshll.u32 %s482_s12, 4  ;;  %s16_s15 = sshll.u32 %s483_s14, 4  ;;  %s29_s13 = int_to_ptr.vmem [resolvable:$true] %s28_s13  ;;  %s510_s15 = int_to_ptr.vmem [resolvable:$true] %s16_s15 }
   0x4   :  { %s388_s18 = scalar_lea.hbm %s586_s1, 512 }
   0x5   :  { %p389_p0 = scmp.ne.s32.totalorder %s586_s1, %s388_s18  ;;  %p392_p1 = scmp.lt.u32.totalorder %s388_s18, %s586_s1 }
   0x7   :  { %p394_p2 = pnand %p392_p1, %p389_p0 }
   0x9   :  { %397 = shalt.err (!%p394_p2)
}
   0xa   :  { %s398_s23 = scalar_lea.vmem %s29_s13, 512  ;;  %p403_p4 = scmp.lt.s32.totalorder %s29_s13, %s29_s13 }
   0xb   :  { %p399_p3 = scmp.ne.s32.totalorder %s29_s13, %s398_s23  ;;  %p404_p5 = scmp.lt.s32.totalorder %s398_s23, %s398_s23 }
   0xd   :  { %p405_p6 = por %p404_p5, %p403_p4 }
   0xf   :  { %p406_p7 = pnand %p405_p6, %p399_p3 }
  0x11   :  { %409 = shalt.err (!%p406_p7)
}
  0x12   :  { %s484_s24 = smov 128   ;;  %s485_s25 = smov 8  }
  0x13   :  { %34 = dma.hbm_to_vmem [thread:$0]  %s586_s1, 512, %s29_s13, [#allocation7], %s484_s24, %s484_s24, %s485_s25  }
  0x14   :  { %s410_s30 = scalar_lea.hbm %s585_s0, 256 }
  0x15   :  { %p411_p8 = scmp.ne.s32.totalorder %s585_s0, %s410_s30  ;;  %p414_p9 = scmp.lt.u32.totalorder %s410_s30, %s585_s0 }
  0x17   :  { %p416_p10 = pnand %p414_p9, %p411_p8 }
  0x19   :  { %419 = shalt.err (!%p416_p10)
}
  0x1a   :  { %s420_s8 = scalar_lea.vmem %s510_s15, 256  ;;  %p425_p12 = scmp.lt.s32.totalorder %s510_s15, %s510_s15 }
  0x1b   :  { %p421_p11 = scmp.ne.s32.totalorder %s510_s15, %s420_s8  ;;  %p426_p13 = scmp.lt.s32.totalorder %s420_s8, %s420_s8 }
  0x1d   :  { %p427_p0 = por %p426_p13, %p425_p12 }
  0x1f   :  { %p428_p1 = pnand %p427_p0, %p421_p11 }
  0x21   :  { %431 = shalt.err (!%p428_p1)
}
  0x22   :  { %22 = dma.hbm_to_vmem [thread:$0]  %s585_s0, 256, %s510_s15, [#allocation4], %s484_s24, %s484_s24, %s485_s25  }
  0x23   :  { %s486_s10 = smov [#allocation8]   ;;  %s432_s14 = scalar_lea.hbm %s587_s2, 1024 }
  0x24   :  { %s40_s11 = sshll.u32 %s486_s10, 4  ;;  %p433_p2 = scmp.ne.s32.totalorder %s587_s2, %s432_s14  ;;  %s41_s11 = int_to_ptr.vmem [resolvable:$true] %s40_s11 }
  0x25   :  { %p436_p3 = scmp.lt.u32.totalorder %s432_s14, %s587_s2 }
  0x27   :  { %p438_p4 = pnand %p436_p3, %p433_p2 }
  0x29   :  { %441 = shalt.err (!%p438_p4)
}
  0x2a   :  { %s442_s20 = scalar_lea.vmem %s41_s11, 1024  ;;  %p447_p6 = scmp.lt.s32.totalorder %s41_s11, %s41_s11 }
  0x2b   :  { %p443_p5 = scmp.ne.s32.totalorder %s41_s11, %s442_s20  ;;  %p448_p7 = scmp.lt.s32.totalorder %s442_s20, %s442_s20 }
  0x2d   :  { %p449_p8 = por %p448_p7, %p447_p6 }
  0x2f   :  { %p450_p9 = pnand %p449_p8, %p443_p5 }
  0x31   :  { %453 = shalt.err (!%p450_p9)
}
  0x32   :  { %46 = dma.hbm_to_vmem [thread:$0]  %s587_s2, 1024, %s41_s11, [#allocation7], %s484_s24, %s484_s24, %s485_s25  }
  0x33   :  { %476 = dma.done.wait [#allocation4], 256  }
  0x34   :  { %477 = vsyncadd [#allocation4], 4294967040 }
  0x35   :  { %478 = dma.done.wait [#allocation7], 1536  }
  0x36   :  { %479 = vsyncadd [#allocation7], 4294965760  ;;  %vm60_vm0 = vcmask 261120   ;;  %v65_v0 = vld [vmem:[#allocation6] sm:$0xff]  ;;  %v66_v1 = vld [vmem:[#allocation6 + $0x8] sm:$0xff]  ;;  %v487_v20 = vmov 0.0  }
  0x37   :  { %v67_v2 = vld [vmem:[#allocation6 + $0x10] sm:$0xff]  ;;  %v348_v3 = vpack.c.bf16 %v66_v1, %v65_v0  ;;  %v68_v4 = vld [vmem:[#allocation6 + $0x18] sm:$0xff]  ;;  %v177_v8 = vld [vmem:[#allocation8] sm:$0xff]  ;;  %62 = vst.msk [vmem:[#allocation2 + $0x8] sm:$0xff] %vm60_vm0, %v487_v20  ;;  %s488_s2 = smov 64   ;;  %vm185_vm1 = vcmask 523264  }
  0x38   :  { %v63_v5 = vld [vmem:[#allocation3] sm:$0xff]  ;;  %v352_v6 = vpack.c.bf16 %v68_v4, %v67_v2  ;;  %v64_v7 = vld [vmem:[#allocation3 + $0x8] sm:$0xff]  ;;  %v178_v9 = vld [vmem:[#allocation8 + $0x8] sm:$0xff]  ;;  %61 = vst.msk [vmem:[#allocation2] sm:$0xff] %vm60_vm0, %v487_v20  ;;  %s489_s21 = smov [#allocation9]  }
  0x39   :  { %326 = vmatprep.mubr.msk.f32.mxu0 %vm60_vm0, %v63_v5  ;;  %349 = vmatprep.subr.bf16.mxu0 %v348_v3  ;;  %v179_v10 = vld [vmem:[#allocation8 + $0x10] sm:$0xff]  ;;  %v356_v11 = vpack.c.bf16 %v178_v9, %v177_v8  ;;  %v180_v12 = vld [vmem:[#allocation8 + $0x18] sm:$0xff]  ;;  %v181_v14 = vld [vmem:[#allocation8 + $0x20] sm:$0xff]  ;;  %s283_s22 = sshll.u32 %s489_s21, 4  ;;  %s284_s22 = int_to_ptr.vmem [resolvable:$true] %s283_s22 }
  0x3a   :  { %351 = vmatpush3.bf16.msra.mxu0 %v348_v3  ;;  %v360_v13 = vpack.c.bf16 %v180_v12, %v179_v10  ;;  %v182_v15 = vld [vmem:[#allocation8 + $0x28] sm:$0xff]  ;;  %v183_v17 = vld [vmem:[#allocation8 + $0x30] sm:$0xff]  ;;  %v184_v18 = vld [vmem:[#allocation8 + $0x38] sm:$0xff]  ;;  %s454_s23 = scalar_lea.vmem %s284_s22, 256  ;;  %p459_p11 = scmp.lt.s32.totalorder %s284_s22, %s284_s22 }
  0x3b   :  { %353 = vmatprep.subr.bf16.mxu0 %v352_v6  ;;  %357 = vmatprep.subr.bf16.mxu1 %v356_v11  ;;  %v364_v16 = vpack.c.bf16 %v182_v15, %v181_v14  ;;  %v368_v19 = vpack.c.bf16 %v184_v18, %v183_v17  ;;  %p455_p10 = scmp.ne.s32.totalorder %s284_s22, %s454_s23  ;;  %p460_p12 = scmp.lt.s32.totalorder %s454_s23, %s454_s23 }
  0x3c   :  { %359 = vmatpush3.bf16.msra.mxu1 %v356_v11 }
  0x3d   :  { %361 = vmatprep.subr.bf16.mxu1 %v360_v13  ;;  %p461_p13 = por %p460_p12, %p459_p11 }
  0x3e   :  { %355 = vmatpush3.bf16.msra.mxu0 %v352_v6  ;;  %v176_v37 = vld [vmem:[#allocation2 + $0x8] sm:$0xff] }
  0x3f   :  { %v175_v38 = vld [vmem:[#allocation2] sm:$0xff]  ;;  %p462_p0 = pnand %p461_p13, %p455_p10 }
  0x40   :  { %363 = vmatpush3.bf16.msra.mxu1 %v360_v13 }
  0x41   :  { %327 = vmatmul.mubr.msk.f32.vlgmr.msra.gmra.mrb[0].mxu0 %vm60_vm0, %v64_v7  ;;  %365 = vmatprep.subr.bf16.mxu1 %v364_v16 }
  0x44   :  { %367 = vmatpush3.bf16.msra.mxu1 %v364_v16 }
  0x45   :  { %369 = vmatprep.subr.bf16.mxu1 %v368_v19 }
  0x48   :  { %371 = vmatpush3.bf16.msra.mxu1 %v368_v19 }
 0x114   :  { %v328_v21 = vpop.f32.mrb[0].mxu0 }
 0x115   :  { %v142_v22 = vpop.f32.mrb[1].mxu0  ;;  %v299_v24 = vmul.f32 -1.442695, %v328_v21 }
 0x116   :  { %167 = vrot.lane.b32.xlu0 %v142_v22, %s488_s2  ;;  %v298_v23 = vmul.f32 -1.442695, %v142_v22 }
 0x118   :  { %380 = vpow2.f32 %v298_v23 }
 0x119   :  { %382 = vpow2.f32 %v299_v24 }
 0x11a   :  { %169 = vrot.lane.b32.xlu0 %v328_v21, %s488_s2 }
 0x122   :  { %v381_v25 = vpop.eup %380 }
 0x123   :  { %v157_v26 = vadd.f32 1.0, %v381_v25  ;;  %v383_v27 = vpop.eup %382 }
 0x124   :  { %v158_v28 = vadd.f32 1.0, %v383_v27 }
 0x125   :  { %384 = vrcp.f32 %v157_v26 }
 0x126   :  { %386 = vrcp.f32 %v158_v28 }
 0x12f   :  { %v385_v29 = vpop.eup %384 }
 0x130   :  { %v163_v30 = vmul.f32 %v385_v29, %v142_v22  ;;  %v387_v31 = vpop.eup %386 }
 0x131   :  { %v164_v34 = vmul.f32 %v387_v31, %v328_v21 }
 0x188   :  { %v168_v32 = vpop.permute.xlu0 %167 }
 0x189   :  { %v173_v33 = vmul.f32 %v168_v32, %v163_v30 }
 0x18b   :  { %345 = vmatprep.mubr.msk.f32.mxu1 %vm185_vm1, %v173_v33 }
 0x18c   :  { %v170_v35 = vpop.permute.xlu0 %169 }
 0x18d   :  { %v174_v36 = vmul.f32 %v170_v35, %v164_v34 }
 0x18f   :  { %346 = vmatmul.mubr.msk.f32.vlgmr.msra.gmra.mrb[0].mxu1 %vm185_vm1, %v174_v36 }
 0x262   :  { %v347_v39 = vpop.f32.mrb[0].mxu1 }
 0x263   :  { %v268_v40 = vadd.f32 %v347_v39, %v176_v37  ;;  %v258_v41 = vpop.f32.mrb[1].mxu1 }
 0x264   :  { %v267_v42 = vadd.f32 %v258_v41, %v175_v38 }
 0x265   :  { %270 = vst.msk [vmem:[#allocation2 + $0x8] sm:$0xff] %vm60_vm0, %v268_v40 }
 0x266   :  { %269 = vst.msk [vmem:[#allocation2] sm:$0xff] %vm60_vm0, %v267_v42 }
 0x26c   :  { %v275_v43 = vld [vmem:[#allocation2 + $0x8] sm:$0xff] }
 0x26d   :  { %v274_v44 = vld [vmem:[#allocation2] sm:$0xff]  ;;  %277 = vst.msk [vmem:[#allocation9 + $0x8] sm:$0xff] %vm60_vm0, %v275_v43 }
 0x26e   :  { %276 = vst.msk [vmem:[#allocation9] sm:$0xff] %vm60_vm0, %v274_v44 }
 0x26f   :  { %465 = shalt.err (!%p462_p0)
}
 0x270   :  { %s466_s28 = scalar_lea.hbm %s588_s3, 256 }
 0x271   :  { %p467_p1 = scmp.ne.s32.totalorder %s588_s3, %s466_s28  ;;  %p470_p2 = scmp.lt.u32.totalorder %s466_s28, %s588_s3 }
 0x273   :  { %p472_p3 = pnand %p470_p2, %p467_p1 }
 0x275   :  { %475 = shalt.err (!%p472_p3)
}
 0x276   :  { %289 = dma.vmem_to_hbm [thread:$0]  %s284_s22, 256, %s588_s3, [#allocation5], %s484_s24, %s484_s24, %s485_s25  }
 0x277   :  { %480 = dma.done.wait [#allocation5], 256  }
 0x278   :  { %481 = vsyncadd [#allocation5], 4294967040 }
 0x279   :  { %293 = vsyncpa [#allocation4], 1 }
 0x27a   :  { %294 = vsyncpa [#allocation7], 1 }
 0x27b   :  { %295 = vsyncpa [#allocation5], 1 }

</bundles_post_ra>
